<compile_context>
chip_gen: v6e
topology: v6e:2x2x1
jax: 0.10.0
libtpu: 0.0.40
codegen_flags: <defaults>
</compile_context>

<pallas_src>
import functools

import jax
import jax.numpy as jnp
from jax import lax
from jax.experimental import pallas as pl
from jax.experimental.pallas import tpu as pltpu

_EPS = 1e-8


def _round_up(x, m):
    return (x + m - 1) // m * m


def _pair_dist_cos(x, anc_t, a_sq):
    """Pairwise L2 distance and cosine similarity.

    x:     (TB, D)  rows are samples
    anc_t: (D, M)   column m is anchor m (pre-transposed in the wrapper)
    a_sq:  (1, M)   precomputed anchor squared norms (grid-invariant)
    returns dist (TB, M), cos (TB, M)
    """
    xa = jnp.dot(x, anc_t, preferred_element_type=jnp.float32)      # (TB, M)
    x_sq = jnp.sum(x * x, axis=-1, keepdims=True)                   # (TB, 1)
    sq = jnp.maximum(x_sq + a_sq - 2.0 * xa, 0.0)
    dist = jnp.sqrt(sq)
    # cos = x.a / max(||x||*||a||, eps) with a single rsqrt on the EUP.
    cos = xa * lax.rsqrt(jnp.maximum(x_sq * a_sq, _EPS * _EPS))
    return dist, cos


def _entropy_weight(dist):
    """exp(-H(normalize(1/dist, p=1, dim=1))) per row, shape (TB, 1)."""
    inv = pl.reciprocal(jnp.maximum(dist, _EPS), approx=True)        # no 1/0
    p = inv * pl.reciprocal(jnp.sum(inv, axis=-1, keepdims=True), approx=True)
    plogp = jnp.where(p > 0.0, p * jnp.log(jnp.maximum(p, 1e-30)), 0.0)
    h = -jnp.sum(plogp, axis=-1, keepdims=True)
    return jnp.exp(-h)


def _head_kernel(feat1_ref, feat2_ref, w1_ref, b1_ref, w2_ref, b2_ref,
                 anc1_t_ref, anc2_t_ref, anc_t_ref,
                 a1_sq_ref, a2_sq_ref, a_sq_ref,
                 out_ref):
    # ---- per-modality linear classifiers (two small MXU matmuls) ----
    logits1 = jnp.dot(feat1_ref[...], w1_ref[...],
                      preferred_element_type=jnp.float32) + b1_ref[...]
    logits2 = jnp.dot(feat2_ref[...], w2_ref[...],
                      preferred_element_type=jnp.float32) + b2_ref[...]

    # ---- per-modality cos / L2 distance classifiers ----
    d1, c1 = _pair_dist_cos(logits1, anc1_t_ref[...], a1_sq_ref[...])
    d2, c2 = _pair_dist_cos(logits2, anc2_t_ref[...], a2_sq_ref[...])

    # ---- entropy-based modality weighting ----
    e1 = _entropy_weight(d1)
    e2 = _entropy_weight(d2)
    inv_esum = pl.reciprocal(e1 + e2, approx=True)
    logits = logits1 * (e1 * inv_esum) + logits2 * (e2 * inv_esum)

    # ---- cos classifier on the fused logits ----
    d, c = _pair_dist_cos(logits, anc_t_ref[...], a_sq_ref[...])

    # Stacked (6, TB, C) output: six plain stores, no lane concatenation.
    out_ref[0] = logits1
    out_ref[1] = logits2
    out_ref[2] = logits
    out_ref[3] = d1 + (1.0 - c1)
    out_ref[4] = d2 + (1.0 - c2)
    out_ref[5] = d + (1.0 - c)


@functools.partial(jax.jit, static_argnames=("block_b",))
def lpl_head(feat_map1, feat_map2, w1, b1, w2, b2,
             img_anchors, spec_anchors, anchors, *, block_b=128):
    """feat_map1/2: (B, Dfeat, H, W) NCHW feature maps from the backbone."""
    B, Dfeat = feat_map1.shape[0], feat_map1.shape[1]
    C = w1.shape[1]

    # adaptive_avg_pool2d(., 1) + flatten in the wrapper: the kernel only
    # sees the small pooled features, not the spatial maps.
    feat1 = feat_map1.reshape(B, Dfeat, -1).astype(jnp.float32).mean(-1)
    feat2 = feat_map2.reshape(B, Dfeat, -1).astype(jnp.float32).mean(-1)

    w1f = w1.astype(jnp.float32)
    w2f = w2.astype(jnp.float32)
    b1f = b1.reshape(1, C).astype(jnp.float32)
    b2f = b2.reshape(1, C).astype(jnp.float32)

    # Pre-transposed anchors + precomputed squared norms (grid-invariant).
    a1_t = img_anchors.T.astype(jnp.float32)
    a2_t = spec_anchors.T.astype(jnp.float32)
    a_t = anchors.T.astype(jnp.float32)
    a1_sq = jnp.sum(a1_t * a1_t, axis=0, keepdims=True)
    a2_sq = jnp.sum(a2_t * a2_t, axis=0, keepdims=True)
    a_sq = jnp.sum(a_t * a_t, axis=0, keepdims=True)

    # Batch tiling: TB multiple of 8 (sublane), pad batch to a multiple of TB.
    TB = min(block_b, _round_up(B, 8))
    Bp = _round_up(B, TB)
    if Bp != B:
        feat1 = jnp.pad(feat1, ((0, Bp - B), (0, 0)))
        feat2 = jnp.pad(feat2, ((0, Bp - B), (0, 0)))
    grid = (Bp // TB,)

    # VMEM budget: double-buffered batch tiles + resident weights/anchors.
    tile_bytes = 4 * TB * (2 * Dfeat + 6 * C)
    resident_bytes = 4 * (2 * Dfeat * C + 2 * C + 3 * C * C + 3 * C)
    vmem_limit = int(min(64 * 1024 * 1024,
                         max(4 * tile_bytes + 2 * resident_bytes + (2 << 20),
                             4 << 20)))

    def resident(shape):
        return pl.BlockSpec(shape, lambda i: (0,) * len(shape))

    out = pl.pallas_call(
        _head_kernel,
        out_shape=jax.ShapeDtypeStruct((6, Bp, C), jnp.float32),
        grid=grid,
        in_specs=[
            pl.BlockSpec((TB, Dfeat), lambda i: (i, 0)),   # pooled feats (img)
            pl.BlockSpec((TB, Dfeat), lambda i: (i, 0)),   # pooled feats (spec)
            resident((Dfeat, C)),                          # classifier1 weight
            resident((1, C)),                              # classifier1 bias
            resident((Dfeat, C)),                          # classifier2 weight
            resident((1, C)),                              # classifier2 bias
            resident((C, C)),                              # img_anchors^T
            resident((C, C)),                              # spec_anchors^T
            resident((C, C)),                              # anchors^T
            resident((1, C)),                              # |img_anchors|^2
            resident((1, C)),                              # |spec_anchors|^2
            resident((1, C)),                              # |anchors|^2
        ],
        out_specs=pl.BlockSpec((6, TB, C), lambda i: (0, i, 0)),
        compiler_params=pltpu.CompilerParams(
            dimension_semantics=("parallel",),
            vmem_limit_bytes=vmem_limit),
    )(feat1, feat2, w1f, b1f, w2f, b2f, a1_t, a2_t, a_t, a1_sq, a2_sq, a_sq)

    logits1 = out[0, :B]
    logits2 = out[1, :B]
    logits = out[2, :B]
    outd1 = out[3, :B]
    outd2 = out[4, :B]
    outd = out[5, :B]
    return logits1, logits2, logits, outd1, outd2, outd


def _reference(f1, f2, w1, b1, w2, b2, a1, a2, a):
    """Pure-JAX mirror of the PyTorch forward (train=True path)."""
    feat1 = f1.reshape(f1.shape[0], f1.shape[1], -1).mean(-1)
    feat2 = f2.reshape(f2.shape[0], f2.shape[1], -1).mean(-1)
    l1 = feat1 @ w1 + b1
    l2 = feat2 @ w2 + b2

    def cosdist(x, anc):
        diff = x[:, None, :] - anc[None, :, :]
        d = jnp.sqrt(jnp.sum(diff * diff, -1))
        num = jnp.sum(x[:, None, :] * anc[None, :, :], -1)
        den = jnp.maximum(jnp.linalg.norm(x, axis=-1)[:, None]
                          * jnp.linalg.norm(anc, axis=-1)[None, :], _EPS)
        return d + (1.0 - num / den), d

    od1, d1 = cosdist(l1, a1)
    od2, d2 = cosdist(l2, a2)

    def ew(d):
        inv = 1.0 / d
        p = inv / jnp.sum(jnp.abs(inv), -1, keepdims=True)
        return jnp.exp(jnp.sum(p * jnp.log(p), -1, keepdims=True))

    e1, e2 = ew(d1), ew(d2)
    l = l1 * (e1 / (e1 + e2)) + l2 * (e2 / (e1 + e2))
    od, _ = cosdist(l, a)
    return l1, l2, l, od1, od2, od


if __name__ == "__main__":
    # Small synthetic shapes consistent with the module's forward:
    B, Dfeat, H, W, C = 2, 32, 4, 4, 16   # batch, backbone channels, spatial, classes
    key = jax.random.PRNGKey(0)
    ks = jax.random.split(key, 9)

    # Backbone feature maps (NCHW) standing in for backbone(img, spec).
    feat_map1 = jax.random.normal(ks[0], (B, Dfeat, H, W), jnp.float32)
    feat_map2 = jax.random.normal(ks[1], (B, Dfeat, H, W), jnp.float32)

    # Linear classifier params, PyTorch-style uniform(-1/sqrt(D), 1/sqrt(D)),
    # stored already transposed as (Dfeat, C); biases as (C,).
    bound = 1.0 / jnp.sqrt(jnp.float32(Dfeat))
    w1 = jax.random.uniform(ks[2], (Dfeat, C), jnp.float32, -bound, bound)
    b1 = jax.random.uniform(ks[3], (C,), jnp.float32, -bound, bound)
    w2 = jax.random.uniform(ks[4], (Dfeat, C), jnp.float32, -bound, bound)
    b2 = jax.random.uniform(ks[5], (C,), jnp.float32, -bound, bound)

    # Anchors are zeros in __init__ and normally set via set_anchors();
    # use deterministic random values so the cos/entropy path is non-degenerate.
    img_anchors = jax.random.normal(ks[6], (C, C), jnp.float32)
    spec_anchors = jax.random.normal(ks[7], (C, C), jnp.float32)
    anchors = jax.random.normal(ks[8], (C, C), jnp.float32)

    outs = lpl_head(feat_map1, feat_map2, w1, b1, w2, b2,
                    img_anchors, spec_anchors, anchors)
    outs = jax.block_until_ready(outs)

    refs = _reference(feat_map1, feat_map2, w1, b1, w2, b2,
                      img_anchors, spec_anchors, anchors)
    for o, r in zip(outs, refs):
        assert o.shape == (B, C), (o.shape, (B, C))
        assert jnp.allclose(o, r, rtol=1e-2, atol=1e-2), (o, r)

    print("KERNEL_OK")
</pallas_src>

<mosaic_0001>
module attributes {stable_mosaic.version = 11 : i64} {
  func.func @_head_kernel(%arg0: i32, %arg1: memref<8x32xf32, #tpu.memory_space<vmem>>, %arg2: memref<8x32xf32, #tpu.memory_space<vmem>>, %arg3: memref<32x16xf32, #tpu.memory_space<vmem>>, %arg4: memref<1x16xf32, #tpu.memory_space<vmem>>, %arg5: memref<32x16xf32, #tpu.memory_space<vmem>>, %arg6: memref<1x16xf32, #tpu.memory_space<vmem>>, %arg7: memref<16x16xf32, #tpu.memory_space<vmem>>, %arg8: memref<16x16xf32, #tpu.memory_space<vmem>>, %arg9: memref<16x16xf32, #tpu.memory_space<vmem>>, %arg10: memref<1x16xf32, #tpu.memory_space<vmem>>, %arg11: memref<1x16xf32, #tpu.memory_space<vmem>>, %arg12: memref<1x16xf32, #tpu.memory_space<vmem>>, %arg13: memref<6x8x16xf32, #tpu.memory_space<vmem>>) attributes {dimension_semantics = [#tpu.dimension_semantics<parallel>], iteration_bounds = array<i64: 1>, scalar_prefetch = 0 : i64, scratch_operands = 0 : i64, tpu.core_type = #tpu.core_type<tc>, window_params = [{transform_indices = @transform_0, window_bounds = array<i64: 8, 32>}, {transform_indices = @transform_1, window_bounds = array<i64: 8, 32>}, {pipeline_mode = #tpu.pipeline_mode<synchronous>, transform_indices = @transform_2, window_bounds = array<i64: 32, 16>}, {pipeline_mode = #tpu.pipeline_mode<synchronous>, transform_indices = @transform_3, window_bounds = array<i64: 1, 16>}, {pipeline_mode = #tpu.pipeline_mode<synchronous>, transform_indices = @transform_4, window_bounds = array<i64: 32, 16>}, {pipeline_mode = #tpu.pipeline_mode<synchronous>, transform_indices = @transform_5, window_bounds = array<i64: 1, 16>}, {pipeline_mode = #tpu.pipeline_mode<synchronous>, transform_indices = @transform_6, window_bounds = array<i64: 16, 16>}, {pipeline_mode = #tpu.pipeline_mode<synchronous>, transform_indices = @transform_7, window_bounds = array<i64: 16, 16>}, {pipeline_mode = #tpu.pipeline_mode<synchronous>, transform_indices = @transform_8, window_bounds = array<i64: 16, 16>}, {pipeline_mode = #tpu.pipeline_mode<synchronous>, transform_indices = @transform_9, window_bounds = array<i64: 1, 16>}, {pipeline_mode = #tpu.pipeline_mode<synchronous>, transform_indices = @transform_10, window_bounds = array<i64: 1, 16>}, {pipeline_mode = #tpu.pipeline_mode<synchronous>, transform_indices = @transform_11, window_bounds = array<i64: 1, 16>}, {transform_indices = @transform_12, window_bounds = array<i64: 6, 8, 16>}]} {
    %c0 = arith.constant 0 : index
    %c0_0 = arith.constant 0 : index
    %0 = vector.load %arg1[%c0, %c0_0] : memref<8x32xf32, #tpu.memory_space<vmem>>, vector<8x32xf32>
    %c0_1 = arith.constant 0 : index
    %c0_2 = arith.constant 0 : index
    %1 = vector.load %arg3[%c0_1, %c0_2] : memref<32x16xf32, #tpu.memory_space<vmem>>, vector<32x16xf32>
    %cst = arith.constant dense<0.000000e+00> : vector<8x16xf32>
    %2 = tpu.matmul %0, %1, %cst {dimension_numbers = #tpu.dot_dimension_numbers<[1], [0], [0], [1], [0, 0, 1, 1], [], []>} : vector<8x32xf32>, vector<32x16xf32>, vector<8x16xf32> -> vector<8x16xf32>
    %c0_3 = arith.constant 0 : index
    %c0_4 = arith.constant 0 : index
    %3 = vector.load %arg4[%c0_3, %c0_4] : memref<1x16xf32, #tpu.memory_space<vmem>>, vector<1x16xf32>
    %4 = vector.broadcast %3 : vector<1x16xf32> to vector<8x16xf32>
    %5 = arith.addf %2, %4 : vector<8x16xf32>
    %c0_5 = arith.constant 0 : index
    %c0_6 = arith.constant 0 : index
    %6 = vector.load %arg2[%c0_5, %c0_6] : memref<8x32xf32, #tpu.memory_space<vmem>>, vector<8x32xf32>
    %c0_7 = arith.constant 0 : index
    %c0_8 = arith.constant 0 : index
    %7 = vector.load %arg5[%c0_7, %c0_8] : memref<32x16xf32, #tpu.memory_space<vmem>>, vector<32x16xf32>
    %cst_9 = arith.constant dense<0.000000e+00> : vector<8x16xf32>
    %8 = tpu.matmul %6, %7, %cst_9 {dimension_numbers = #tpu.dot_dimension_numbers<[1], [0], [0], [1], [0, 0, 1, 1], [], []>} : vector<8x32xf32>, vector<32x16xf32>, vector<8x16xf32> -> vector<8x16xf32>
    %c0_10 = arith.constant 0 : index
    %c0_11 = arith.constant 0 : index
    %9 = vector.load %arg6[%c0_10, %c0_11] : memref<1x16xf32, #tpu.memory_space<vmem>>, vector<1x16xf32>
    %10 = vector.broadcast %9 : vector<1x16xf32> to vector<8x16xf32>
    %11 = arith.addf %8, %10 : vector<8x16xf32>
    %c0_12 = arith.constant 0 : index
    %c0_13 = arith.constant 0 : index
    %12 = vector.load %arg7[%c0_12, %c0_13] : memref<16x16xf32, #tpu.memory_space<vmem>>, vector<16x16xf32>
    %c0_14 = arith.constant 0 : index
    %c0_15 = arith.constant 0 : index
    %13 = vector.load %arg10[%c0_14, %c0_15] : memref<1x16xf32, #tpu.memory_space<vmem>>, vector<1x16xf32>
    %cst_16 = arith.constant dense<0.000000e+00> : vector<8x16xf32>
    %14 = tpu.matmul %5, %12, %cst_16 {dimension_numbers = #tpu.dot_dimension_numbers<[1], [0], [0], [1], [0, 0, 1, 1], [], []>} : vector<8x16xf32>, vector<16x16xf32>, vector<8x16xf32> -> vector<8x16xf32>
    %15 = arith.mulf %5, %5 : vector<8x16xf32>
    %cst_17 = arith.constant dense<0.000000e+00> : vector<8xf32>
    %16 = vector.multi_reduction <add>, %15, %cst_17 [1] : vector<8x16xf32> to vector<8xf32>
    %17 = vector.shape_cast %16 : vector<8xf32> to vector<8x1xf32>
    %18 = vector.broadcast %17 : vector<8x1xf32> to vector<8x16xf32>
    %19 = vector.broadcast %13 : vector<1x16xf32> to vector<8x16xf32>
    %20 = arith.addf %18, %19 : vector<8x16xf32>
    %cst_18 = arith.constant 2.000000e+00 : f32
    %21 = vector.broadcast %cst_18 : f32 to vector<8x16xf32>
    %22 = arith.mulf %21, %14 : vector<8x16xf32>
    %23 = arith.subf %20, %22 : vector<8x16xf32>
    %cst_19 = arith.constant 0.000000e+00 : f32
    %24 = vector.broadcast %cst_19 : f32 to vector<8x16xf32>
    %25 = arith.maximumf %23, %24 : vector<8x16xf32>
    %26 = math.sqrt %25 : vector<8x16xf32>
    %27 = vector.broadcast %17 : vector<8x1xf32> to vector<8x16xf32>
    %28 = vector.broadcast %13 : vector<1x16xf32> to vector<8x16xf32>
    %29 = arith.mulf %27, %28 : vector<8x16xf32>
    %cst_20 = arith.constant 1.000000e-16 : f32
    %30 = vector.broadcast %cst_20 : f32 to vector<8x16xf32>
    %31 = arith.maximumf %29, %30 : vector<8x16xf32>
    %32 = math.rsqrt %31 : vector<8x16xf32>
    %33 = arith.mulf %14, %32 : vector<8x16xf32>
    %c0_21 = arith.constant 0 : index
    %c0_22 = arith.constant 0 : index
    %34 = vector.load %arg8[%c0_21, %c0_22] : memref<16x16xf32, #tpu.memory_space<vmem>>, vector<16x16xf32>
    %c0_23 = arith.constant 0 : index
    %c0_24 = arith.constant 0 : index
    %35 = vector.load %arg11[%c0_23, %c0_24] : memref<1x16xf32, #tpu.memory_space<vmem>>, vector<1x16xf32>
    %cst_25 = arith.constant dense<0.000000e+00> : vector<8x16xf32>
    %36 = tpu.matmul %11, %34, %cst_25 {dimension_numbers = #tpu.dot_dimension_numbers<[1], [0], [0], [1], [0, 0, 1, 1], [], []>} : vector<8x16xf32>, vector<16x16xf32>, vector<8x16xf32> -> vector<8x16xf32>
    %37 = arith.mulf %11, %11 : vector<8x16xf32>
    %cst_26 = arith.constant dense<0.000000e+00> : vector<8xf32>
    %38 = vector.multi_reduction <add>, %37, %cst_26 [1] : vector<8x16xf32> to vector<8xf32>
    %39 = vector.shape_cast %38 : vector<8xf32> to vector<8x1xf32>
    %40 = vector.broadcast %39 : vector<8x1xf32> to vector<8x16xf32>
    %41 = vector.broadcast %35 : vector<1x16xf32> to vector<8x16xf32>
    %42 = arith.addf %40, %41 : vector<8x16xf32>
    %cst_27 = arith.constant 2.000000e+00 : f32
    %43 = vector.broadcast %cst_27 : f32 to vector<8x16xf32>
    %44 = arith.mulf %43, %36 : vector<8x16xf32>
    %45 = arith.subf %42, %44 : vector<8x16xf32>
    %cst_28 = arith.constant 0.000000e+00 : f32
    %46 = vector.broadcast %cst_28 : f32 to vector<8x16xf32>
    %47 = arith.maximumf %45, %46 : vector<8x16xf32>
    %48 = math.sqrt %47 : vector<8x16xf32>
    %49 = vector.broadcast %39 : vector<8x1xf32> to vector<8x16xf32>
    %50 = vector.broadcast %35 : vector<1x16xf32> to vector<8x16xf32>
    %51 = arith.mulf %49, %50 : vector<8x16xf32>
    %cst_29 = arith.constant 1.000000e-16 : f32
    %52 = vector.broadcast %cst_29 : f32 to vector<8x16xf32>
    %53 = arith.maximumf %51, %52 : vector<8x16xf32>
    %54 = math.rsqrt %53 : vector<8x16xf32>
    %55 = arith.mulf %36, %54 : vector<8x16xf32>
    %cst_30 = arith.constant 9.99999993E-9 : f32
    %56 = vector.broadcast %cst_30 : f32 to vector<8x16xf32>
    %57 = arith.maximumf %26, %56 : vector<8x16xf32>
    %58 = tpu.reciprocal %57 {approx = true} : vector<8x16xf32> -> vector<8x16xf32>
    %cst_31 = arith.constant dense<0.000000e+00> : vector<8xf32>
    %59 = vector.multi_reduction <add>, %58, %cst_31 [1] : vector<8x16xf32> to vector<8xf32>
    %60 = vector.shape_cast %59 : vector<8xf32> to vector<8x1xf32>
    %61 = tpu.reciprocal %60 {approx = true} : vector<8x1xf32> -> vector<8x1xf32>
    %62 = vector.broadcast %61 : vector<8x1xf32> to vector<8x16xf32>
    %63 = arith.mulf %58, %62 : vector<8x16xf32>
    %cst_32 = arith.constant 0.000000e+00 : f32
    %64 = vector.broadcast %cst_32 : f32 to vector<8x16xf32>
    %65 = arith.cmpf ogt, %63, %64 : vector<8x16xf32>
    %cst_33 = arith.constant 1.000000e-30 : f32
    %66 = vector.broadcast %cst_33 : f32 to vector<8x16xf32>
    %67 = arith.maximumf %63, %66 : vector<8x16xf32>
    %68 = math.log %67 : vector<8x16xf32>
    %69 = arith.mulf %63, %68 : vector<8x16xf32>
    %cst_34 = arith.constant 0.000000e+00 : f32
    %70 = vector.broadcast %cst_34 : f32 to vector<8x16xf32>
    %71 = arith.select %65, %69, %70 : vector<8x16xi1>, vector<8x16xf32>
    %cst_35 = arith.constant dense<0.000000e+00> : vector<8xf32>
    %72 = vector.multi_reduction <add>, %71, %cst_35 [1] : vector<8x16xf32> to vector<8xf32>
    %73 = vector.shape_cast %72 : vector<8xf32> to vector<8x1xf32>
    %cst_36 = arith.constant 0.000000e+00 : f32
    %74 = vector.broadcast %cst_36 : f32 to vector<8x1xf32>
    %75 = arith.subf %74, %73 : vector<8x1xf32>
    %cst_37 = arith.constant 0.000000e+00 : f32
    %76 = vector.broadcast %cst_37 : f32 to vector<8x1xf32>
    %77 = arith.subf %76, %75 : vector<8x1xf32>
    %78 = math.exp %77 : vector<8x1xf32>
    %cst_38 = arith.constant 9.99999993E-9 : f32
    %79 = vector.broadcast %cst_38 : f32 to vector<8x16xf32>
    %80 = arith.maximumf %48, %79 : vector<8x16xf32>
    %81 = tpu.reciprocal %80 {approx = true} : vector<8x16xf32> -> vector<8x16xf32>
    %cst_39 = arith.constant dense<0.000000e+00> : vector<8xf32>
    %82 = vector.multi_reduction <add>, %81, %cst_39 [1] : vector<8x16xf32> to vector<8xf32>
    %83 = vector.shape_cast %82 : vector<8xf32> to vector<8x1xf32>
    %84 = tpu.reciprocal %83 {approx = true} : vector<8x1xf32> -> vector<8x1xf32>
    %85 = vector.broadcast %84 : vector<8x1xf32> to vector<8x16xf32>
    %86 = arith.mulf %81, %85 : vector<8x16xf32>
    %cst_40 = arith.constant 0.000000e+00 : f32
    %87 = vector.broadcast %cst_40 : f32 to vector<8x16xf32>
    %88 = arith.cmpf ogt, %86, %87 : vector<8x16xf32>
    %cst_41 = arith.constant 1.000000e-30 : f32
    %89 = vector.broadcast %cst_41 : f32 to vector<8x16xf32>
    %90 = arith.maximumf %86, %89 : vector<8x16xf32>
    %91 = math.log %90 : vector<8x16xf32>
    %92 = arith.mulf %86, %91 : vector<8x16xf32>
    %cst_42 = arith.constant 0.000000e+00 : f32
    %93 = vector.broadcast %cst_42 : f32 to vector<8x16xf32>
    %94 = arith.select %88, %92, %93 : vector<8x16xi1>, vector<8x16xf32>
    %cst_43 = arith.constant dense<0.000000e+00> : vector<8xf32>
    %95 = vector.multi_reduction <add>, %94, %cst_43 [1] : vector<8x16xf32> to vector<8xf32>
    %96 = vector.shape_cast %95 : vector<8xf32> to vector<8x1xf32>
    %cst_44 = arith.constant 0.000000e+00 : f32
    %97 = vector.broadcast %cst_44 : f32 to vector<8x1xf32>
    %98 = arith.subf %97, %96 : vector<8x1xf32>
    %cst_45 = arith.constant 0.000000e+00 : f32
    %99 = vector.broadcast %cst_45 : f32 to vector<8x1xf32>
    %100 = arith.subf %99, %98 : vector<8x1xf32>
    %101 = math.exp %100 : vector<8x1xf32>
    %102 = arith.addf %78, %101 : vector<8x1xf32>
    %103 = tpu.reciprocal %102 {approx = true} : vector<8x1xf32> -> vector<8x1xf32>
    %104 = arith.mulf %78, %103 : vector<8x1xf32>
    %105 = vector.broadcast %104 : vector<8x1xf32> to vector<8x16xf32>
    %106 = arith.mulf %5, %105 : vector<8x16xf32>
    %107 = arith.mulf %101, %103 : vector<8x1xf32>
    %108 = vector.broadcast %107 : vector<8x1xf32> to vector<8x16xf32>
    %109 = arith.mulf %11, %108 : vector<8x16xf32>
    %110 = arith.addf %106, %109 : vector<8x16xf32>
    %c0_46 = arith.constant 0 : index
    %c0_47 = arith.constant 0 : index
    %111 = vector.load %arg9[%c0_46, %c0_47] : memref<16x16xf32, #tpu.memory_space<vmem>>, vector<16x16xf32>
    %c0_48 = arith.constant 0 : index
    %c0_49 = arith.constant 0 : index
    %112 = vector.load %arg12[%c0_48, %c0_49] : memref<1x16xf32, #tpu.memory_space<vmem>>, vector<1x16xf32>
    %cst_50 = arith.constant dense<0.000000e+00> : vector<8x16xf32>
    %113 = tpu.matmul %110, %111, %cst_50 {dimension_numbers = #tpu.dot_dimension_numbers<[1], [0], [0], [1], [0, 0, 1, 1], [], []>} : vector<8x16xf32>, vector<16x16xf32>, vector<8x16xf32> -> vector<8x16xf32>
    %114 = arith.mulf %110, %110 : vector<8x16xf32>
    %cst_51 = arith.constant dense<0.000000e+00> : vector<8xf32>
    %115 = vector.multi_reduction <add>, %114, %cst_51 [1] : vector<8x16xf32> to vector<8xf32>
    %116 = vector.shape_cast %115 : vector<8xf32> to vector<8x1xf32>
    %117 = vector.broadcast %116 : vector<8x1xf32> to vector<8x16xf32>
    %118 = vector.broadcast %112 : vector<1x16xf32> to vector<8x16xf32>
    %119 = arith.addf %117, %118 : vector<8x16xf32>
    %cst_52 = arith.constant 2.000000e+00 : f32
    %120 = vector.broadcast %cst_52 : f32 to vector<8x16xf32>
    %121 = arith.mulf %120, %113 : vector<8x16xf32>
    %122 = arith.subf %119, %121 : vector<8x16xf32>
    %cst_53 = arith.constant 0.000000e+00 : f32
    %123 = vector.broadcast %cst_53 : f32 to vector<8x16xf32>
    %124 = arith.maximumf %122, %123 : vector<8x16xf32>
    %125 = math.sqrt %124 : vector<8x16xf32>
    %126 = vector.broadcast %116 : vector<8x1xf32> to vector<8x16xf32>
    %127 = vector.broadcast %112 : vector<1x16xf32> to vector<8x16xf32>
    %128 = arith.mulf %126, %127 : vector<8x16xf32>
    %cst_54 = arith.constant 1.000000e-16 : f32
    %129 = vector.broadcast %cst_54 : f32 to vector<8x16xf32>
    %130 = arith.maximumf %128, %129 : vector<8x16xf32>
    %131 = math.rsqrt %130 : vector<8x16xf32>
    %132 = arith.mulf %113, %131 : vector<8x16xf32>
    %c0_55 = arith.constant 0 : index
    %c0_56 = arith.constant 0 : index
    %c0_57 = arith.constant 0 : index
    %133 = vector.load %arg13[%c0_55, %c0_56, %c0_57] : memref<6x8x16xf32, #tpu.memory_space<vmem>>, vector<1x8x16xf32>
    %134 = vector.shape_cast %133 : vector<1x8x16xf32> to vector<8x16xf32>
    %135 = vector.shape_cast %5 : vector<8x16xf32> to vector<1x8x16xf32>
    tpu.vector_store %arg13[%c0_55, %c0_56, %c0_57], %135 {strides = array<i32>} : memref<6x8x16xf32, #tpu.memory_space<vmem>>, vector<1x8x16xf32>,
    %c1 = arith.constant 1 : index
    %c0_58 = arith.constant 0 : index
    %c0_59 = arith.constant 0 : index
    %136 = vector.load %arg13[%c1, %c0_58, %c0_59] : memref<6x8x16xf32, #tpu.memory_space<vmem>>, vector<1x8x16xf32>
    %137 = vector.shape_cast %136 : vector<1x8x16xf32> to vector<8x16xf32>
    %138 = vector.shape_cast %11 : vector<8x16xf32> to vector<1x8x16xf32>
    tpu.vector_store %arg13[%c1, %c0_58, %c0_59], %138 {strides = array<i32>} : memref<6x8x16xf32, #tpu.memory_space<vmem>>, vector<1x8x16xf32>,
    %c2 = arith.constant 2 : index
    %c0_60 = arith.constant 0 : index
    %c0_61 = arith.constant 0 : index
    %139 = vector.load %arg13[%c2, %c0_60, %c0_61] : memref<6x8x16xf32, #tpu.memory_space<vmem>>, vector<1x8x16xf32>
    %140 = vector.shape_cast %139 : vector<1x8x16xf32> to vector<8x16xf32>
    %141 = vector.shape_cast %110 : vector<8x16xf32> to vector<1x8x16xf32>
    tpu.vector_store %arg13[%c2, %c0_60, %c0_61], %141 {strides = array<i32>} : memref<6x8x16xf32, #tpu.memory_space<vmem>>, vector<1x8x16xf32>,
    %cst_62 = arith.constant 1.000000e+00 : f32
    %142 = vector.broadcast %cst_62 : f32 to vector<8x16xf32>
    %143 = arith.subf %142, %33 : vector<8x16xf32>
    %144 = arith.addf %26, %143 : vector<8x16xf32>
    %c3 = arith.constant 3 : index
    %c0_63 = arith.constant 0 : index
    %c0_64 = arith.constant 0 : index
    %145 = vector.load %arg13[%c3, %c0_63, %c0_64] : memref<6x8x16xf32, #tpu.memory_space<vmem>>, vector<1x8x16xf32>
    %146 = vector.shape_cast %145 : vector<1x8x16xf32> to vector<8x16xf32>
    %147 = vector.shape_cast %144 : vector<8x16xf32> to vector<1x8x16xf32>
    tpu.vector_store %arg13[%c3, %c0_63, %c0_64], %147 {strides = array<i32>} : memref<6x8x16xf32, #tpu.memory_space<vmem>>, vector<1x8x16xf32>,
    %cst_65 = arith.constant 1.000000e+00 : f32
    %148 = vector.broadcast %cst_65 : f32 to vector<8x16xf32>
    %149 = arith.subf %148, %55 : vector<8x16xf32>
    %150 = arith.addf %48, %149 : vector<8x16xf32>
    %c4 = arith.constant 4 : index
    %c0_66 = arith.constant 0 : index
    %c0_67 = arith.constant 0 : index
    %151 = vector.load %arg13[%c4, %c0_66, %c0_67] : memref<6x8x16xf32, #tpu.memory_space<vmem>>, vector<1x8x16xf32>
    %152 = vector.shape_cast %151 : vector<1x8x16xf32> to vector<8x16xf32>
    %153 = vector.shape_cast %150 : vector<8x16xf32> to vector<1x8x16xf32>
    tpu.vector_store %arg13[%c4, %c0_66, %c0_67], %153 {strides = array<i32>} : memref<6x8x16xf32, #tpu.memory_space<vmem>>, vector<1x8x16xf32>,
    %cst_68 = arith.constant 1.000000e+00 : f32
    %154 = vector.broadcast %cst_68 : f32 to vector<8x16xf32>
    %155 = arith.subf %154, %132 : vector<8x16xf32>
    %156 = arith.addf %125, %155 : vector<8x16xf32>
    %c5 = arith.constant 5 : index
    %c0_69 = arith.constant 0 : index
    %c0_70 = arith.constant 0 : index
    %157 = vector.load %arg13[%c5, %c0_69, %c0_70] : memref<6x8x16xf32, #tpu.memory_space<vmem>>, vector<1x8x16xf32>
    %158 = vector.shape_cast %157 : vector<1x8x16xf32> to vector<8x16xf32>
    %159 = vector.shape_cast %156 : vector<8x16xf32> to vector<1x8x16xf32>
    tpu.vector_store %arg13[%c5, %c0_69, %c0_70], %159 {strides = array<i32>} : memref<6x8x16xf32, #tpu.memory_space<vmem>>, vector<1x8x16xf32>,
    return
  }
  func.func @transform_0(%arg0: i32) -> (i32, i32) {
    %c0_i32 = arith.constant 0 : i32
    %c0_i32_0 = arith.constant 0 : i32
    return %arg0, %c0_i32 : i32, i32
  }
  func.func @transform_1(%arg0: i32) -> (i32, i32) {
    %c0_i32 = arith.constant 0 : i32
    %c0_i32_0 = arith.constant 0 : i32
    return %arg0, %c0_i32 : i32, i32
  }
  func.func @transform_2(%arg0: i32) -> (i32, i32) {
    %c0_i32 = arith.constant 0 : i32
    %c0_i32_0 = arith.constant 0 : i32
    %c0_i32_1 = arith.constant 0 : i32
    return %c0_i32, %c0_i32_0 : i32, i32
  }
  func.func @transform_3(%arg0: i32) -> (i32, i32) {
    %c0_i32 = arith.constant 0 : i32
    %c0_i32_0 = arith.constant 0 : i32
    %c0_i32_1 = arith.constant 0 : i32
    return %c0_i32, %c0_i32_0 : i32, i32
  }
  func.func @transform_4(%arg0: i32) -> (i32, i32) {
    %c0_i32 = arith.constant 0 : i32
    %c0_i32_0 = arith.constant 0 : i32
    %c0_i32_1 = arith.constant 0 : i32
    return %c0_i32, %c0_i32_0 : i32, i32
  }
  func.func @transform_5(%arg0: i32) -> (i32, i32) {
    %c0_i32 = arith.constant 0 : i32
    %c0_i32_0 = arith.constant 0 : i32
    %c0_i32_1 = arith.constant 0 : i32
    return %c0_i32, %c0_i32_0 : i32, i32
  }
  func.func @transform_6(%arg0: i32) -> (i32, i32) {
    %c0_i32 = arith.constant 0 : i32
    %c0_i32_0 = arith.constant 0 : i32
    %c0_i32_1 = arith.constant 0 : i32
    return %c0_i32, %c0_i32_0 : i32, i32
  }
  func.func @transform_7(%arg0: i32) -> (i32, i32) {
    %c0_i32 = arith.constant 0 : i32
    %c0_i32_0 = arith.constant 0 : i32
    %c0_i32_1 = arith.constant 0 : i32
    return %c0_i32, %c0_i32_0 : i32, i32
  }
  func.func @transform_8(%arg0: i32) -> (i32, i32) {
    %c0_i32 = arith.constant 0 : i32
    %c0_i32_0 = arith.constant 0 : i32
    %c0_i32_1 = arith.constant 0 : i32
    return %c0_i32, %c0_i32_0 : i32, i32
  }
  func.func @transform_9(%arg0: i32) -> (i32, i32) {
    %c0_i32 = arith.constant 0 : i32
    %c0_i32_0 = arith.constant 0 : i32
    %c0_i32_1 = arith.constant 0 : i32
    return %c0_i32, %c0_i32_0 : i32, i32
  }
  func.func @transform_10(%arg0: i32) -> (i32, i32) {
    %c0_i32 = arith.constant 0 : i32
    %c0_i32_0 = arith.constant 0 : i32
    %c0_i32_1 = arith.constant 0 : i32
    return %c0_i32, %c0_i32_0 : i32, i32
  }
  func.func @transform_11(%arg0: i32) -> (i32, i32) {
    %c0_i32 = arith.constant 0 : i32
    %c0_i32_0 = arith.constant 0 : i32
    %c0_i32_1 = arith.constant 0 : i32
    return %c0_i32, %c0_i32_0 : i32, i32
  }
  func.func @transform_12(%arg0: i32) -> (i32, i32, i32) {
    %c0_i32 = arith.constant 0 : i32
    %c0_i32_0 = arith.constant 0 : i32
    %c0_i32_1 = arith.constant 0 : i32
    return %c0_i32, %arg0, %c0_i32_0 : i32, i32, i32
  }
}

</mosaic_0001>

<bundles_post_ra>
// kernel: lpl_head.1
= control target key start
LH: loop header
LB: loop body
LE: loop exit
PB: predicated region body
PF: predicated region fallthrough
CT: control target
= control target key end

     0   :  { %v693_v0 = vmov 0.0   ;;  %vm53_vm0 = vcmask 261120   ;;  %vm694_vm1 = vmmov 0   ;;  %vm215_vm2 = vcmask 130048   ;;  %s895_s2 = inlined_call_operand.vmem [shape: f32[32,16], index: 2, kind: input, shape index: {}]   ;;  %s896_s4 = inlined_call_operand.vmem [shape: f32[32,16], index: 4, kind: input, shape index: {}]   ;;  %s897_s0 = inlined_call_operand.vmem [shape: f32[8,32], index: 0, kind: input, shape index: {}]   ;;  %s898_s1 = inlined_call_operand.vmem [shape: f32[8,32], index: 1, kind: input, shape index: {}]   ;;  %s899_s6 = inlined_call_operand.vmem [shape: f32[16,16], index: 6, kind: input, shape index: {}]   ;;  %s900_s7 = inlined_call_operand.vmem [shape: f32[16,16], index: 7, kind: input, shape index: {}]   ;;  %s901_s3 = inlined_call_operand.vmem [shape: f32[1,16], index: 3, kind: input, shape index: {}]   ;;  %s902_s5 = inlined_call_operand.vmem [shape: f32[1,16], index: 5, kind: input, shape index: {}]   ;;  %s903_s12 = inlined_call_operand.vmem [shape: f32[6,8,16], index: 12, kind: output, shape index: {}]   ;;  %s904_s9 = inlined_call_operand.vmem [shape: f32[1,16], index: 9, kind: input, shape index: {}]   ;;  %s905_s10 = inlined_call_operand.vmem [shape: f32[1,16], index: 10, kind: input, shape index: {}]   ;;  %s906_s8 = inlined_call_operand.vmem [shape: f32[16,16], index: 8, kind: input, shape index: {}]   ;;  %s907_s11 = inlined_call_operand.vmem [shape: f32[1,16], index: 11, kind: input, shape index: {}]  }
   0x1   :  { %618 = vmatprep.subr.mxu0 %v693_v0  ;;  %629 = vmatprep.subr.mxu1 %v693_v0  ;;  %v45_v1 = vld [vmem:[%s895_s2 + $0x18] sm:$0xff]  ;;  %v44_v3 = vld [vmem:[%s895_s2 + $0x10] sm:$0xff]  ;;  %v43_v5 = vld [vmem:[%s895_s2 + $0x8] sm:$0xff] }
   0x2   :  { %v131_v2 = vld [vmem:[%s896_s4 + $0x18] sm:$0xff]  ;;  %619 = vmatpush3.msra.mxu0 %v45_v1  ;;  %v130_v4 = vld [vmem:[%s896_s4 + $0x10] sm:$0xff]  ;;  %v129_v6 = vld [vmem:[%s896_s4 + $0x8] sm:$0xff]  ;;  %626 = vmatprep.mubr.msk.f32.mxu0 %vm694_vm1, %v693_v0 }
   0x3   :  { %630 = vmatpush3.msra.mxu1 %v131_v2  ;;  %620 = vmatprep.subr.mxu0 %v693_v0  ;;  %v42_v7 = vld [vmem:[%s895_s2] sm:$0xff]  ;;  %v213_v11 = vld [vmem:[%s899_s6 + $0x8] sm:$0xff] }
   0x4   :  { %631 = vmatprep.subr.mxu1 %v693_v0  ;;  %621 = vmatpush3.msra.mxu0 %v44_v3  ;;  %v128_v8 = vld [vmem:[%s896_s4] sm:$0xff]  ;;  %v315_v12 = vld [vmem:[%s900_s7 + $0x8] sm:$0xff] }
   0x5   :  { %632 = vmatpush3.msra.mxu1 %v130_v4  ;;  %622 = vmatprep.subr.mxu0 %v693_v0  ;;  %v41_v9 = vld [vmem:[%s897_s0] sm:$0xff] }
   0x6   :  { %633 = vmatprep.subr.mxu1 %v693_v0  ;;  %623 = vmatpush3.msra.mxu0 %v43_v5  ;;  %v127_v10 = vld [vmem:[%s898_s1] sm:$0xff] }
   0x7   :  { %634 = vmatpush3.msra.mxu1 %v129_v6  ;;  %624 = vmatprep.subr.mxu0 %v693_v0  ;;  %v212_v13 = vld [vmem:[%s899_s6] sm:$0xff] }
   0x8   :  { %635 = vmatprep.subr.mxu1 %v693_v0  ;;  %625 = vmatpush3.msra.mxu0 %v42_v7  ;;  %v314_v14 = vld [vmem:[%s900_s7] sm:$0xff] }
   0x9   :  { %636 = vmatpush3.msra.mxu1 %v128_v8  ;;  %637 = vmatprep.mubr.msk.f32.mxu1 %vm694_vm1, %v693_v0  ;;  %v584_v15 = vld [vmem:[%s901_s3] ss:$0 sm:$0xff] }
   0xa   :  { %627 = vmatmul.mubr.msk.f32.vlgmr.msra.gmra.mxu0 %vm53_vm0, %v41_v9  ;;  %638 = vmatmul.mubr.msk.f32.vlgmr.msra.gmra.mxu1 %vm53_vm0, %v127_v10  ;;  %v586_v16 = vld [vmem:[%s902_s5] ss:$0 sm:$0xff] }
   0xb   :  { %640 = vmatprep.subr.mxu0 %v693_v0  ;;  %647 = vmatprep.subr.mxu1 %v693_v0  ;;  %v589_v28 = vld [vmem:[%s904_s9] ss:$0 sm:$0xff] }
   0xc   :  { %641 = vmatpush3.msra.mxu0 %v213_v11  ;;  %644 = vmatprep.mubr.msk.f32.mxu0 %vm694_vm1, %v693_v0  ;;  %v591_v29 = vld [vmem:[%s905_s10] ss:$0 sm:$0xff] }
   0xd   :  { %642 = vmatprep.subr.mxu0 %v693_v0  ;;  %651 = vmatprep.mubr.msk.f32.mxu1 %vm694_vm1, %v693_v0 }
   0xe   :  { %648 = vmatpush3.msra.mxu1 %v315_v12  ;;  %643 = vmatpush3.msra.mxu0 %v212_v13 }
   0xf   :  { %649 = vmatprep.subr.mxu1 %v693_v0  ;;  %654 = vmatprep.subr.mxu0 %v693_v0 }
  0x10   :  { %650 = vmatpush3.msra.mxu1 %v314_v14 }
  0xca   :  { %v123_v17 = vpop.f32.mrf.mxu0  ;;  %v208_v18 = vpop.f32.mrf.mxu1 }
  0xcb   :  { %v829_v19 = vadd.f32 %v584_v15, %v123_v17  ;;  %v831_v20 = vadd.f32 %v586_v16, %v208_v18 }
  0xcc   :  { %v628_v21 = vpop.f32.mrf.mxu0  ;;  %v639_v22 = vpop.f32.mrf.mxu1 }
  0xcd   :  { %563 = vst.msk [vmem:[%s903_s12] sm:$0xff] %vm215_vm2, %v829_v19  ;;  %594 = vst.msk [vmem:[%s903_s12 + $0x8] sm:$0xff] %vm215_vm2, %v831_v20  ;;  %645 = vmatmul.mubr.msk.f32.vlgmr.msra.gmra.mxu0 %vm215_vm2, %v829_v19  ;;  %652 = vmatmul.mubr.msk.f32.vlgmr.msra.gmra.mxu1 %vm215_vm2, %v831_v20  ;;  %v289_v23 = vmul.f32 %v829_v19, %v829_v19  ;;  %v390_v24 = vmul.f32 %v831_v20, %v831_v20 }
  0xce   :  { %658 = vmatprep.mubr.msk.f32.mxu0 %vm694_vm1, %v693_v0 }
  0xcf   :  { %v290_v25 = vsel %vm215_vm2, %v289_v23, 0.0  ;;  %v391_v26 = vsel %vm215_vm2, %v390_v24, 0.0 }
  0xd0   :  { %291 = vadd.xlane.f32.xlu0 %v290_v25 }
  0xd4   :  { %392 = vadd.xlane.f32.xlu0 %v391_v26 }
 0x159   :  { %v292_v27 = vpop.xlane.xlu0 %291 }
 0x15a   :  { %v310_v31 = vmul.f32 %v589_v28, %v292_v27  ;;  %v299_v36 = vadd.f32 %v589_v28, %v292_v27  ;;  %v463_v28 = vld [vmem:[%s906_s8 + $0x8] sm:$0xff] }
 0x15b   :  { %655 = vmatpush3.msra.mxu0 %v463_v28 }
 0x15c   :  { %v311_v33 = vmax.f32 %v310_v31, 1e-16  ;;  %656 = vmatprep.subr.mxu0 %v693_v0 }
 0x15d   :  { %v393_v30 = vpop.xlane.xlu0 %392 }
 0x15e   :  { %v411_v32 = vmul.f32 %v591_v29, %v393_v30  ;;  %v400_v37 = vadd.f32 %v591_v29, %v393_v30  ;;  %663 = vrsqrt.f32 %v311_v33  ;;  %v462_v29 = vld [vmem:[%s906_s8] sm:$0xff] }
 0x15f   :  { %657 = vmatpush3.msra.mxu0 %v462_v29 }
 0x160   :  { %v412_v40 = vmax.f32 %v411_v32, 1e-16 }
 0x162   :  { %665 = vrsqrt.f32 %v412_v40 }
 0x16b   :  { %v664_v47 = vpop.eup %663 }
 0x16f   :  { %v666_v49 = vpop.eup %665 }
 0x18d   :  { %v285_v34 = vpop.f32.mrf.mxu0  ;;  %v386_v35 = vpop.f32.mrf.mxu1 }
 0x18e   :  { %v300_v38 = vmul.f32 2.0, %v285_v34  ;;  %v401_v39 = vmul.f32 2.0, %v386_v35  ;;  %v313_v48 = vmul.f32 %v664_v47, %v285_v34  ;;  %v414_v51 = vmul.f32 %v666_v49, %v386_v35 }
 0x18f   :  { %v646_v41 = vpop.f32.mrf.mxu0  ;;  %v653_v42 = vpop.f32.mrf.mxu1 }
 0x190   :  { %v301_v43 = vsub.f32 %v299_v36, %v300_v38  ;;  %v402_v44 = vsub.f32 %v400_v37, %v401_v39  ;;  %v568_v55 = vsub.f32 1.0, %v313_v48  ;;  %v572_v61 = vsub.f32 1.0, %v414_v51  ;;  %v593_v48 = vld [vmem:[%s907_s11] ss:$0 sm:$0xff] }
 0x192   :  { %v302_v45 = vmax.f32 %v301_v43, 0.0  ;;  %v403_v46 = vmax.f32 %v402_v44, 0.0 }
 0x194   :  { %667 = vrsqrt.f32 %v302_v45  ;;  %vm305_vm3 = vcmp.eq.f32.partialorder %v302_v45, inf  ;;  %v308_v54 = vand.u32 2147483648, %v302_v45  ;;  %vm307_vm4 = vcmp.eq.f32.partialorder %v302_v45, 0.0 }
 0x195   :  { %669 = vrsqrt.f32 %v403_v46  ;;  %vm406_vm5 = vcmp.eq.f32.partialorder %v403_v46, inf  ;;  %v409_v58 = vand.u32 2147483648, %v403_v46  ;;  %vm408_vm6 = vcmp.eq.f32.partialorder %v403_v46, 0.0 }
 0x1a1   :  { %v668_v50 = vpop.eup %667 }
 0x1a2   :  { %v670_v52 = vpop.eup %669  ;;  %v304_v53 = vmul.f32 %v668_v50, %v302_v45 }
 0x1a3   :  { %v405_v56 = vmul.f32 %v670_v52, %v403_v46 }
 0x1a4   :  { %v306_v57 = vsel %vm305_vm3, %v302_v45, %v304_v53 }
 0x1a5   :  { %v309_v59 = vsel %vm307_vm4, %v308_v54, %v306_v57  ;;  %v407_v60 = vsel %vm406_vm5, %v403_v46, %v405_v56 }
 0x1a6   :  { %v415_v62 = vmax.f32 %v309_v59, 1e-08  ;;  %v569_v63 = vadd.f32 %v568_v55, %v309_v59  ;;  %v410_v1 = vsel %vm408_vm6, %v409_v58, %v407_v60 }
 0x1a7   :  { %v435_v2 = vmax.f32 %v410_v1, 1e-08  ;;  %v573_v3 = vadd.f32 %v572_v61, %v410_v1 }
 0x1a8   :  { %671 = vrcp.f32 %v415_v62  ;;  %596 = vst.msk [vmem:[%s903_s12 + $0x18] sm:$0xff] %vm215_vm2, %v569_v63 }
 0x1a9   :  { %597 = vst.msk [vmem:[%s903_s12 + $0x20] sm:$0xff] %vm215_vm2, %v573_v3  ;;  %673 = vrcp.f32 %v435_v2 }
 0x1b5   :  { %v672_v4 = vpop.eup %671 }
 0x1b6   :  { %v417_v5 = vsel %vm215_vm2, %v672_v4, 0.0  ;;  %v674_v6 = vpop.eup %673 }
 0x1b7   :  { %418 = vadd.xlane.f32.xlu1 %v417_v5  ;;  %v437_v7 = vsel %vm215_vm2, %v674_v6, 0.0 }
 0x1bb   :  { %438 = vadd.xlane.f32.xlu1 %v437_v7 }
 0x240   :  { %v419_v8 = vpop.xlane.xlu1 %418 }
 0x241   :  { %675 = vrcp.f32 %v419_v8 }
 0x244   :  { %v439_v9 = vpop.xlane.xlu1 %438 }
 0x245   :  { %677 = vrcp.f32 %v439_v9 }
 0x24e   :  { %v676_v10 = vpop.eup %675 }
 0x24f   :  { %v421_v11 = vmul.f32 %v676_v10, %v672_v4 }
 0x251   :  { %v423_v12 = vmax.f32 %v421_v11, 1e-30  ;;  %vm422_vm7 = vcmp.gt.f32.partialorder %v421_v11, 0.0 }
 0x252   :  { %v678_v13 = vpop.eup %677 }
 0x253   :  { %679 = vlog2.f32 %v423_v12  ;;  %v441_v14 = vmul.f32 %v678_v13, %v674_v6 }
 0x255   :  { %v443_v15 = vmax.f32 %v441_v14, 1e-30  ;;  %vm442_vm8 = vcmp.gt.f32.partialorder %v441_v14, 0.0 }
 0x257   :  { %681 = vlog2.f32 %v443_v15 }
 0x260   :  { %v680_v16 = vpop.eup %679 }
 0x261   :  { %v425_v17 = vmul.f32 0.6931472, %v680_v16 }
 0x263   :  { %v426_v18 = vmul.f32 %v425_v17, %v421_v11 }
 0x264   :  { %v682_v21 = vpop.eup %681 }
 0x265   :  { %v427_v22 = vsel %vm422_vm7, %v426_v18, 0.0  ;;  %v445_v23 = vmul.f32 0.6931472, %v682_v21 }
 0x266   :  { %v428_v24 = vsel %vm215_vm2, %v427_v22, 0.0 }
 0x267   :  { %429 = vadd.xlane.f32.xlu0 %v428_v24  ;;  %v446_v25 = vmul.f32 %v445_v23, %v441_v14 }
 0x269   :  { %v447_v26 = vsel %vm442_vm8, %v446_v25, 0.0 }
 0x26a   :  { %v448_v27 = vsel %vm215_vm2, %v447_v26, 0.0 }
 0x26b   :  { %449 = vadd.xlane.f32.xlu1 %v448_v27 }
 0x2f0   :  { %v430_v30 = vpop.xlane.xlu0 %429 }
 0x2f1   :  { %v431_v31 = vsub.f32 0.0, %v430_v30 }
 0x2f3   :  { %v432_v32 = vsub.f32 0.0, %v431_v31 }
 0x2f4   :  { %v450_v33 = vpop.xlane.xlu1 %449 }
 0x2f5   :  { %v451_v34 = vsub.f32 0.0, %v450_v33  ;;  %v433_v35 = vmul.f32 1.442695, %v432_v32 }
 0x2f7   :  { %v452_v36 = vsub.f32 0.0, %v451_v34  ;;  %683 = vpow2.f32 %v433_v35 }
 0x2f9   :  { %v453_v37 = vmul.f32 1.442695, %v452_v36 }
 0x2fb   :  { %685 = vpow2.f32 %v453_v37 }
 0x304   :  { %v684_v38 = vpop.eup %683 }
 0x308   :  { %v686_v39 = vpop.eup %685 }
 0x309   :  { %v455_v40 = vadd.f32 %v686_v39, %v684_v38 }
 0x30b   :  { %687 = vrcp.f32 %v455_v40 }
 0x318   :  { %v688_v41 = vpop.eup %687 }
 0x319   :  { %v459_v42 = vmul.f32 %v688_v41, %v686_v39  ;;  %v457_v43 = vmul.f32 %v688_v41, %v684_v38 }
 0x31b   :  { %v458_v0 = vmul.f32 %v457_v43, %v829_v19  ;;  %v460_v44 = vmul.f32 %v459_v42, %v831_v20 }
 0x31d   :  { %v461_v45 = vadd.f32 %v460_v44, %v458_v0 }
 0x31f   :  { %659 = vmatmul.mubr.msk.f32.vlgmr.msra.gmra.mxu0 %vm215_vm2, %v461_v45  ;;  %595 = vst.msk [vmem:[%s903_s12 + $0x10] sm:$0xff] %vm215_vm2, %v461_v45  ;;  %v538_v46 = vmul.f32 %v461_v45, %v461_v45 }
 0x321   :  { %v539_v47 = vsel %vm215_vm2, %v538_v46, 0.0 }
 0x322   :  { %540 = vadd.xlane.f32.xlu0 %v539_v47 }
 0x3ab   :  { %v541_v49 = vpop.xlane.xlu0 %540 }
 0x3ac   :  { %v559_v19 = vmul.f32 %v593_v48, %v541_v49  ;;  %v548_v20 = vadd.f32 %v593_v48, %v541_v49 }
 0x3ae   :  { %v560_v51 = vmax.f32 %v559_v19, 1e-16 }
 0x3b0   :  { %689 = vrsqrt.f32 %v560_v51 }
 0x3bd   :  { %v690_v56 = vpop.eup %689 }
 0x3df   :  { %v534_v50 = vpop.f32.mrf.mxu0 }
 0x3e0   :  { %v549_v52 = vmul.f32 2.0, %v534_v50  ;;  %v562_v57 = vmul.f32 %v690_v56, %v534_v50 }
 0x3e1   :  { %v660_v53 = vpop.f32.mrf.mxu0 }
 0x3e2   :  { %v550_v54 = vsub.f32 %v548_v20, %v549_v52  ;;  %v576_v62 = vsub.f32 1.0, %v562_v57 }
 0x3e4   :  { %v551_v55 = vmax.f32 %v550_v54, 0.0 }
 0x3e6   :  { %691 = vrsqrt.f32 %v551_v55  ;;  %vm554_vm9 = vcmp.eq.f32.partialorder %v551_v55, inf  ;;  %v557_v60 = vand.u32 2147483648, %v551_v55  ;;  %vm556_vm10 = vcmp.eq.f32.partialorder %v551_v55, 0.0 }
 0x3f3   :  { %v692_v58 = vpop.eup %691 }
 0x3f4   :  { %v553_v59 = vmul.f32 %v692_v58, %v551_v55 }
 0x3f6   :  { %v555_v61 = vsel %vm554_vm9, %v551_v55, %v553_v59 }
 0x3f7   :  { %v558_v63 = vsel %vm556_vm10, %v557_v60, %v555_v61 }
 0x3f8   :  { %v577_v1 = vadd.f32 %v576_v62, %v558_v63 }
 0x3fa   :  { %598 = vst.msk [vmem:[%s903_s12 + $0x28] sm:$0xff] %vm215_vm2, %v577_v1 }

</bundles_post_ra>
